<compile_context>
chip_gen: v5e
topology: v5e:2x2
jax: 0.10.0
libtpu: 0.0.40
codegen_flags: <defaults>
</compile_context>

<pallas_src>
import jax
import jax.numpy as jnp
from jax.experimental import pallas as pl
from jax.experimental.pallas import tpu as pltpu


def _l_exp_kernel(mean_ref, x_ref, pw_ref, ph_ref, o_ref):
    # mean_ref: (1,)           SMEM scalar prefetch: exposure target
    # x_ref:    (Bt, C, H, W)  streamed input block (native dtype)
    # pw_ref:   (W, Wp)        grid-constant, entries 1/p (pool along W)
    # ph_ref:   (Hp, H)        grid-constant, entries 1/p (pool along H)
    # o_ref:    (1, 1, Wp)     per-step partial sum of squared errors
    x = x_ref[...]                                    # (Bt, C, H, W)
    bt = x.shape[0]

    # Channel mean first, on the VPU (cheap: kernel is HBM-bandwidth bound).
    xm = jnp.mean(x, axis=1)                          # (Bt, H, W)

    # Separable average pooling as two tiny batched MXU matmuls, f32 accumulation.
    pw = jnp.broadcast_to(pw_ref[...], (bt,) + pw_ref.shape)   # (Bt, W, Wp)
    ph = jnp.broadcast_to(ph_ref[...], (bt,) + ph_ref.shape)   # (Bt, Hp, H)
    t = jnp.einsum("bhw,bwk->bhk", xm, pw,
                   preferred_element_type=jnp.float32)          # (Bt, H, Wp)
    pooled = jnp.einsum("bqh,bhk->bqk", ph, t,
                        preferred_element_type=jnp.float32)     # (Bt, Hp, Wp)

    diff = pooled - mean_ref[0]                       # (Bt, Hp, Wp), f32
    # Reduce batch-tile + Hp axes in-kernel; the tiny cross-lane / cross-step
    # finish (and the divide) are done in the JAX wrapper.
    o_ref[...] = jnp.sum(diff * diff, axis=(0, 1), keepdims=True)   # (1, 1, Wp)


def _vmem_capacity_bytes():
    try:
        return int(pltpu.get_tpu_info().vmem_capacity_bytes)
    except Exception:
        return 64 * 1024 * 1024          # conservative fallback: v7x per-core VMEM


def _tile_cost_bytes(bt, C, H, W, p, itemsize):
    Hp, Wp = H // p, W // p
    x_blk = 2 * bt * C * H * W * itemsize             # double-buffered streamed block
    consts = 2 * (W * Wp + Hp * H) * itemsize         # pw/ph (default double-buffered)
    bcast = bt * (W * Wp + Hp * H) * itemsize         # in-kernel broadcast copies
    interm = bt * H * W * itemsize                    # channel mean
    interm += bt * H * Wp * 4                         # W-pooled intermediate (f32)
    interm += 3 * bt * Hp * Wp * 4                    # pooled / diff / diff^2 (f32)
    outs = 2 * 1 * 1 * Wp * 4                         # double-buffered output row
    return x_blk + consts + bcast + interm + outs


def _choose_batch_tile(B, C, H, W, p, itemsize, budget_bytes):
    candidates = [bt for bt in range(1, B + 1) if B % bt == 0]
    fitting = [bt for bt in candidates
               if _tile_cost_bytes(bt, C, H, W, p, itemsize) <= budget_bytes]
    if not fitting:
        fitting = [1]  # nothing fits the (conservative) budget; stream 1 image/step
    # v7x megacore: prefer the largest tile that still leaves an even number of
    # grid steps (>= 2) so the "parallel" axis can split across both TensorCores.
    even_steps = [bt for bt in fitting if (B // bt) % 2 == 0]
    return max(even_steps) if even_steps else max(fitting)


def l_exp(x, patch_size, mean_val):
    """Pallas implementation of L_exp.forward. x: (B, C, H, W)."""
    B, C, H, W = x.shape
    p = int(patch_size)
    assert H % p == 0 and W % p == 0
    Hp, Wp = H // p, W // p

    vmem_cap = _vmem_capacity_bytes()
    vmem_limit = (7 * vmem_cap) // 8                  # ~112 MiB v5e/v6e, ~56 MiB v7x
    block_budget = vmem_cap // 2

    Bt = _choose_batch_tile(B, C, H, W, p, x.dtype.itemsize, block_budget)
    G = B // Bt

    # Separable pooling factors (built in x.dtype; a few KB each).
    pw = (jnp.arange(W)[:, None] // p == jnp.arange(Wp)[None, :]).astype(x.dtype) / p
    ph = (jnp.arange(Hp)[:, None] == jnp.arange(H)[None, :] // p).astype(x.dtype) / p

    mean_arr = jnp.full((1,), mean_val, dtype=jnp.float32)   # SMEM scalar prefetch

    partials = pl.pallas_call(
        _l_exp_kernel,
        out_shape=jax.ShapeDtypeStruct((G, 1, Wp), jnp.float32),
        grid_spec=pltpu.PrefetchScalarGridSpec(
            num_scalar_prefetch=1,
            grid=(G,),
            in_specs=[
                pl.BlockSpec((Bt, C, H, W), lambda s, m: (s, 0, 0, 0)),  # streamed x
                pl.BlockSpec((W, Wp), lambda s, m: (0, 0)),              # grid-constant
                pl.BlockSpec((Hp, H), lambda s, m: (0, 0)),              # grid-constant
            ],
            out_specs=pl.BlockSpec((1, 1, Wp), lambda s, m: (s, 0, 0)),
        ),
        compiler_params=pltpu.CompilerParams(
            dimension_semantics=("parallel",),        # disjoint per-step outputs
            vmem_limit_bytes=vmem_limit,
        ),
    )(mean_arr, x, pw, ph)

    # Final cross-lane / cross-step reduction + mean in plain JAX.
    return jnp.sum(partials) / jnp.float32(B * Hp * Wp)


def l_exp_ref(x, patch_size, mean_val):
    """Pure-JAX reference mirroring the PyTorch module."""
    B, C, H, W = x.shape
    m = jnp.mean(x, axis=1, keepdims=True)                                   # (B,1,H,W)
    m = m.reshape(B, 1, H // patch_size, patch_size, W // patch_size, patch_size)
    pooled = jnp.mean(m, axis=(3, 5))                                        # (B,1,Hp,Wp)
    return jnp.mean((pooled - mean_val) ** 2)


if __name__ == "__main__":
    patch_size = 4
    mean_val = 0.6
    B, C, H, W = 2, 4, 16, 16

    key = jax.random.PRNGKey(0)
    x = jax.random.uniform(key, (B, C, H, W), dtype=jnp.float32)

    out = l_exp(x, patch_size, mean_val)
    out = jax.block_until_ready(out)

    ref = l_exp_ref(x, patch_size, mean_val)
    assert jnp.allclose(out, ref, atol=1e-5, rtol=1e-5), (out, ref)

    print("KERNEL_OK")
</pallas_src>

<mosaic_0001>
module attributes {stable_mosaic.version = 11 : i64} {
  func.func @_l_exp_kernel(%arg0: i32, %arg1: memref<1xf32, #tpu.memory_space<smem>>, %arg2: memref<1x4x16x16xf32, #tpu.memory_space<vmem>>, %arg3: memref<16x4xf32, #tpu.memory_space<vmem>>, %arg4: memref<4x16xf32, #tpu.memory_space<vmem>>, %arg5: memref<1x1x4xf32, #tpu.memory_space<vmem>>) attributes {dimension_semantics = [#tpu.dimension_semantics<parallel>], iteration_bounds = array<i64: 2>, scalar_prefetch = 1 : i64, scratch_operands = 0 : i64, tpu.core_type = #tpu.core_type<tc>, window_params = [{transform_indices = @transform_0, window_bounds = array<i64: 1, 4, 16, 16>}, {pipeline_mode = #tpu.pipeline_mode<synchronous>, transform_indices = @transform_1, window_bounds = array<i64: 16, 4>}, {pipeline_mode = #tpu.pipeline_mode<synchronous>, transform_indices = @transform_2, window_bounds = array<i64: 4, 16>}, {transform_indices = @transform_3, window_bounds = array<i64: 1, 1, 4>}]} {
    %c0 = arith.constant 0 : index
    %c0_0 = arith.constant 0 : index
    %c0_1 = arith.constant 0 : index
    %c0_2 = arith.constant 0 : index
    %0 = vector.load %arg2[%c0, %c0_0, %c0_1, %c0_2] : memref<1x4x16x16xf32, #tpu.memory_space<vmem>>, vector<1x4x16x16xf32>
    %cst = arith.constant dense<0.000000e+00> : vector<1x16x16xf32>
    %1 = vector.multi_reduction <add>, %0, %cst [1] : vector<1x4x16x16xf32> to vector<1x16x16xf32>
    %cst_3 = arith.constant 4.000000e+00 : f32
    %2 = vector.broadcast %cst_3 : f32 to vector<1x16x16xf32>
    %3 = arith.divf %1, %2 : vector<1x16x16xf32>
    %c0_4 = arith.constant 0 : index
    %c0_5 = arith.constant 0 : index
    %4 = vector.load %arg3[%c0_4, %c0_5] : memref<16x4xf32, #tpu.memory_space<vmem>>, vector<16x4xf32>
    %5 = vector.shape_cast %4 : vector<16x4xf32> to vector<1x16x4xf32>
    %c0_6 = arith.constant 0 : index
    %c0_7 = arith.constant 0 : index
    %6 = vector.load %arg4[%c0_6, %c0_7] : memref<4x16xf32, #tpu.memory_space<vmem>>, vector<4x16xf32>
    %7 = vector.shape_cast %6 : vector<4x16xf32> to vector<1x4x16xf32>
    "tpu.trace_start"() <{level = 10 : i32, message = "bhw,bwk->bhk"}> : () -> ()
    %cst_8 = arith.constant dense<0.000000e+00> : vector<1x16x4xf32>
    %8 = tpu.matmul %3, %5, %cst_8 {dimension_numbers = #tpu.dot_dimension_numbers<[2], [1], [1], [2], [0, 0, 0, 1, 1, 2], [0], [0]>} : vector<1x16x16xf32>, vector<1x16x4xf32>, vector<1x16x4xf32> -> vector<1x16x4xf32>
    "tpu.trace_stop"() : () -> ()
    "tpu.trace_start"() <{level = 10 : i32, message = "bqh,bhk->bqk"}> : () -> ()
    %cst_9 = arith.constant dense<0.000000e+00> : vector<1x4x4xf32>
    %9 = tpu.matmul %7, %8, %cst_9 {dimension_numbers = #tpu.dot_dimension_numbers<[2], [1], [1], [2], [0, 0, 0, 1, 1, 2], [0], [0]>} : vector<1x4x16xf32>, vector<1x16x4xf32>, vector<1x4x4xf32> -> vector<1x4x4xf32>
    "tpu.trace_stop"() : () -> ()
    %c0_10 = arith.constant 0 : index
    %10 = memref.load %arg1[%c0_10] : memref<1xf32, #tpu.memory_space<smem>>
    %11 = vector.broadcast %10 : f32 to vector<1x4x4xf32>
    %12 = arith.subf %9, %11 : vector<1x4x4xf32>
    %13 = arith.mulf %12, %12 : vector<1x4x4xf32>
    %cst_11 = arith.constant dense<0.000000e+00> : vector<4xf32>
    %14 = vector.multi_reduction <add>, %13, %cst_11 [0, 1] : vector<1x4x4xf32> to vector<4xf32>
    %15 = vector.shape_cast %14 : vector<4xf32> to vector<1x1x4xf32>
    %c0_12 = arith.constant 0 : index
    %c0_13 = arith.constant 0 : index
    %c0_14 = arith.constant 0 : index
    %16 = vector.load %arg5[%c0_12, %c0_13, %c0_14] : memref<1x1x4xf32, #tpu.memory_space<vmem>>, vector<1x1x4xf32>
    tpu.vector_store %arg5[%c0_12, %c0_13, %c0_14], %15 {strides = array<i32>} : memref<1x1x4xf32, #tpu.memory_space<vmem>>, vector<1x1x4xf32>,
    return
  }
  func.func @transform_0(%arg0: i32, %arg1: memref<1xf32, #tpu.memory_space<smem>>) -> (i32, i32, i32, i32) {
    %c0_i32 = arith.constant 0 : i32
    %c0_i32_0 = arith.constant 0 : i32
    %c0_i32_1 = arith.constant 0 : i32
    %c0_i32_2 = arith.constant 0 : i32
    return %arg0, %c0_i32, %c0_i32_0, %c0_i32_1 : i32, i32, i32, i32
  }
  func.func @transform_1(%arg0: i32, %arg1: memref<1xf32, #tpu.memory_space<smem>>) -> (i32, i32) {
    %c0_i32 = arith.constant 0 : i32
    %c0_i32_0 = arith.constant 0 : i32
    %c0_i32_1 = arith.constant 0 : i32
    return %c0_i32, %c0_i32_0 : i32, i32
  }
  func.func @transform_2(%arg0: i32, %arg1: memref<1xf32, #tpu.memory_space<smem>>) -> (i32, i32) {
    %c0_i32 = arith.constant 0 : i32
    %c0_i32_0 = arith.constant 0 : i32
    %c0_i32_1 = arith.constant 0 : i32
    return %c0_i32, %c0_i32_0 : i32, i32
  }
  func.func @transform_3(%arg0: i32, %arg1: memref<1xf32, #tpu.memory_space<smem>>) -> (i32, i32, i32) {
    %c0_i32 = arith.constant 0 : i32
    %c0_i32_0 = arith.constant 0 : i32
    %c0_i32_1 = arith.constant 0 : i32
    return %arg0, %c0_i32, %c0_i32_0 : i32, i32, i32
  }
}

</mosaic_0001>

<bundles_post_ra>
// kernel: tpu_custom_call.1
= control target key start
LH: loop header
LB: loop body
LE: loop exit
PB: predicated region body
PF: predicated region fallthrough
CT: control target
= control target key end

     0   :  { %s716_s0 = inlined_call_operand.<no memory space> [shape: f32[1], index: 0, kind: input, shape index: {}]   ;;  %s717_s1 = inlined_call_operand.hbm [shape: f32[2,4,16,16], index: 1, kind: input, shape index: {}]   ;;  %s718_s2 = inlined_call_operand.vmem [shape: f32[16,4], index: 2, kind: input, shape index: {}]   ;;  %s719_s3 = inlined_call_operand.vmem [shape: f32[4,16], index: 3, kind: input, shape index: {}]   ;;  %s720_s4 = inlined_call_operand.hbm [shape: f32[2,1,4], index: 4, kind: output, shape index: {}]  }
   0x1   :  { %9 = sst [smem:[#allocation3]] %s716_s0 }
   0x2   :  { %10 = vsyncpa [#allocation5], 0 }
   0x3   :  { %12 = vsyncpa [#allocation5 + $0x1], 0 }
   0x4   :  { %13 = vsyncpa [#allocation6], 0 }
   0x5   :  { %15 = vsyncpa [#allocation6 + $0x1], 0  ;;  %s568_s17 = smov 0   ;;  %s570_s18 = smov 0  }
   0x6   :  { %s572_s19 = smov 0   ;;  %s574_s20 = smov 0  }
   0x7 LB: > { %s589_s0 = sadd.s32 4294967295, %s535_s20   ;;  %s372_s21 = sadd.s32 4294967294, %s535_s20   ;;  %s535_s20 = sphi %s574_s20, %s730_s20   ;;  %s531_s19 = sphi %s572_s19, %s729_s19   ;;  %s527_s18 = sphi %s570_s18, %s728_s18   ;;  %s523_s17 = sphi %s568_s17, %s727_s17  }
   0x8   : > { %s593_s22 = sadd.s32 1, %s535_s20   ;;  %s28_s23 = sadd.s32 1, %s531_s19 }
   0x9   : > { %s25_s24 = ssub.s32 %s535_s20, %s593_s22  ;;  %p35_p0 = scmp.ne.s32.totalorder %s531_s19, %s527_s18 }
   0xa   : > { %p26_p1 = scmp.eq.s32.totalorder %s25_s24, 0  ;;  %p36_p2 = scmp.eq.s32.totalorder %s535_s20, 0 }
   0xb   : > { %p41_p3 = scmp.ne.s32.totalorder %s527_s18, %s523_s17  ;;  %p42_p4 = scmp.eq.s32.totalorder %s589_s0, 0 }
   0xc   : > { %s605_s25 = scalar_select %p26_p1, %s531_s19, %s28_s23  }
   0xd   : > { %p607_p5 = por %p36_p2, %p35_p0  ;;  %p611_p6 = por %p42_p4, %p41_p3 }
   0xe   : > { %p107_p7 = scmp.eq.s32.totalorder %s589_s0, 1  ;;  %p113_p8 = scmp.eq.s32.totalorder %s372_s21, 1 }
   0xf   : > { %p400_p10 = scmp.lt.s32.totalorder %s535_s20, 2  ;;  %s139_s30 = sand.u32 1, %s531_s19  }
  0x10   : > { %p618_p11 = por %p107_p7, %p35_p0  ;;  %p622_p12 = por %p113_p8, %p41_p3 }
  0x11   : > { %s385_s5 = sshll.u32 %s535_s20, 6  ;;  %s375_s6 = sshll.u32 %s139_s30, 6 }
  0x12   : > { %s148_s9 = scalar_lea.hbm %s717_s1, %s385_s5  ;;  %s143_s11 = scalar_lea.vmem [#allocation4], %s375_s6 }
  0x13   : > { %s149_s10 = sshll.u32 %s148_s9, 4  ;;  %s151_s12 = sshll.u32 %s143_s11, 4  ;;  %s150_s10 = int_to_ptr.hbm [resolvable:$true] %s149_s10  ;;  %s152_s12 = int_to_ptr.vmem [resolvable:$true] %s151_s12 }
  0x14   : > { %p633_p13 = pnand %p400_p10, %p607_p5  ;;  %p378_p0 = scmp.ge.s32.totalorder %s535_s20, 1 }
  0x15   : > { %p159_p1 = scmp.lt.s32.totalorder %s535_s20, 3  ;;  %s140_s14 = scalar_lea.sflag [#allocation5], %s139_s30 }
  0x16   : > { %s439_s15 = sshra.s32 %s150_s10, 4  ;;  %p443_p3 = pneg %p633_p13  ;;  %s440_s15 = int_to_ptr.hbm [resolvable:$true] %s439_s15 }
  0x17   : > { %s441_s16 = scalar_lea.hbm %s440_s15, 64  ;;  %s446_s24 = scalar_lea.hbm %s717_s1, 128 }
  0x18   : > { %p442_p2 = scmp.ne.s32.totalorder %s440_s15, %s441_s16  ;;  %p447_p5 = scmp.lt.s32.totalorder %s440_s15, %s717_s1 }
  0x19   : > { %p448_p8 = scmp.lt.s32.totalorder %s446_s24, %s441_s16 }
  0x1a   : > { %p444_p4 = pnand %p443_p3, %p442_p2 }
  0x1b   : > { %p449_p10 = por %p448_p8, %p447_p5 }
  0x1c   : > { %p445_p7 = pneg %p444_p4 }
  0x1e   : > { %p450_p9 = pnand %p449_p10, %p445_p7 }
  0x20   : > { %453 = shalt.err (!%p450_p9)
}
  0x21   : > { %s537_s30 = smov 128   ;;  %s538_s6 = smov 8  }
  0x22   : > { %395 = dma.hbm_to_vmem [thread:$0]  (!%p633_p13), %s150_s10, 1024, %s152_s12, %s140_s14, %s537_s30, %s537_s30, %s538_s6  }
  0x23   : > { %p160_p2 = pnand %p378_p0, %p159_p1 }
  0x24   : > { %s654_s7 = sand.u32 (!%p160_p2), 1, %s527_s18  }
  0x25   : > { %163 = sbr.rel (%p160_p2) target bundleno = 343 (0x157), region = 32  ;;  %s379_s8 = sshll.u32 (!%p160_p2), %s654_s7, 6 }
  0x26   : > { %s166_s9 = scalar_lea.sflag (!%p160_p2), [#allocation5], %s654_s7  ;;  %s169_s11 = scalar_lea.vmem (!%p160_p2), [#allocation4], %s379_s8 }
  0x2a   : > { %514 = dma.done.wait (%p611_p6), %s166_s9, 1024  }
  0x2b   : > { %516 = vsyncadd (%p611_p6), %s166_s9, 4294966272  ;;  %v539_v0 = vmov 4.0   ;;  %vm200_vm0 = vcmask 130048   ;;  %v225_v2 = vld [vmem:[%s718_s2 + $0x8] sm:$0xff]  ;;  %v224_v3 = vld [vmem:[%s718_s2] sm:$0xff]  ;;  %s279_s16 = sld [smem:[#allocation3]]  ;;  %s302_s24 = scalar_lea.hbm %s720_s4, %s589_s0 }
  0x2c   : > { %437 = vrcp.f32 %v539_v0  ;;  %v193_v4 = vld [vmem:[%s169_s11 + $0x8] sm:$0xff]  ;;  %386 = vmatpush.msra.mxu2 %v225_v2  ;;  %v195_v5 = vld [vmem:[%s169_s11 + $0x18] sm:$0xff]  ;;  %247 = vmatpush.msra.mxu0 %v225_v2  ;;  %v192_v12 = vld [vmem:[%s169_s11] sm:$0xff]  ;;  %vm283_vm2 = vcmask 27648   ;;  %s191_s26 = scalar_lea.vmem [#allocation7], %s654_s7  ;;  %s306_s30 = sshll.u32 %s302_s24, 4  ;;  %s307_s30 = int_to_ptr.hbm [resolvable:$true] %s306_s30 }
  0x2d   : > { %v197_v6 = vld [vmem:[%s169_s11 + $0x28] sm:$0xff]  ;;  %v199_v7 = vld [vmem:[%s169_s11 + $0x38] sm:$0xff]  ;;  %v208_v8 = vsel %vm200_vm0, %v193_v4, 0.0  ;;  %v209_v10 = vsel %vm200_vm0, %v195_v5, 0.0  ;;  %v194_v13 = vld [vmem:[%s169_s11 + $0x10] sm:$0xff]  ;;  %v201_v18 = vsel %vm200_vm0, %v192_v12, 0.0 }
  0x2e   : > { %v211_v11 = vsel %vm200_vm0, %v197_v6, 0.0  ;;  %v196_v14 = vld [vmem:[%s169_s11 + $0x20] sm:$0xff]  ;;  %387 = vmatpush.msra.mxu2 %v224_v3  ;;  %v210_v15 = vadd.f32 %v209_v10, %v208_v8  ;;  %248 = vmatpush.msra.mxu0 %v224_v3  ;;  %v198_v17 = vld [vmem:[%s169_s11 + $0x30] sm:$0xff]  ;;  %v202_v19 = vsel %vm200_vm0, %v194_v13, 0.0  ;;  %v213_v20 = vsel %vm200_vm0, %v199_v7, 0.0  ;;  %s304_s5 = sshll.u32 %s191_s26, 4  ;;  %s305_s5 = int_to_ptr.vmem [resolvable:$true] %s304_s5 }
  0x2f   : > { %v203_v21 = vadd.f32 %v202_v19, %v201_v18  ;;  %v204_v22 = vsel %vm200_vm0, %v196_v14, 0.0  ;;  %v206_v25 = vsel %vm200_vm0, %v198_v17, 0.0  ;;  %v226_v35 = vld [vmem:[%s719_s3] sm:$0xf]  ;;  %vm291_vm3 = vcmask 24576   ;;  %s294_s6 = scalar_lea.sflag [#allocation6], %s654_s7 }
  0x30   : > { %v212_v23 = vadd.f32 %v211_v11, %v210_v15  ;;  %s483_s8 = sshra.s32 %s307_s30, 4  ;;  %s489_s10 = scalar_lea.hbm %s720_s4, 2  ;;  %s484_s8 = int_to_ptr.hbm [resolvable:$true] %s483_s8 }
  0x31   : > { %v205_v26 = vadd.f32 %v204_v22, %v203_v21  ;;  %v280_v36 = vstv %s279_s16  ;;  %s485_s9 = scalar_lea.hbm %s484_s8, 1  ;;  %p490_p0 = scmp.lt.s32.totalorder %s484_s8, %s720_s4 }
  0x32   : > { %v438_v1 = vpop.eup %437  ;;  %v214_v27 = vadd.f32 %v213_v20, %v212_v23  ;;  %p486_p6 = scmp.ne.s32.totalorder %s484_s8, %s485_s9  ;;  %p491_p1 = scmp.lt.s32.totalorder %s489_s10, %s485_s9 }
  0x33   : > { %v216_v9 = vmul.f32 4.0, %v438_v1  ;;  %vm220_vm1 = vweird.f32 %v438_v1  ;;  %v207_v29 = vadd.f32 %v206_v25, %v205_v26 }
  0x34   : > { %p487_p9 = pnand %p486_p6, %p618_p11  ;;  %p492_p3 = por %p491_p1, %p490_p0 }
  0x35   : > { %v217_v16 = vsub.f32 1.0, %v216_v9 }
  0x36   : > { %p488_p13 = pneg %p487_p9 }
  0x37   : > { %v218_v24 = vmul.f32 %v438_v1, %v217_v16 }
  0x38   : > { %p493_p4 = pnand %p492_p3, %p488_p13 }
  0x39   : > { %v219_v28 = vadd.f32 %v438_v1, %v218_v24 }
  0x3b   : > { %v221_v30 = vsel %vm220_vm1, %v438_v1, %v219_v28 }
  0x3c   : > { %v223_v31 = vmul.f32 %v221_v30, %v214_v27  ;;  %v222_v32 = vmul.f32 %v221_v30, %v207_v29 }
  0x3e   : > { %381 = vmatmul.msk.f32.vlgmr.msra.gmra.mxu2 %vm200_vm0, %v223_v31  ;;  %380 = vmatmul.msk.f32.vlgmr.msra.gmra.mxu0 %vm200_vm0, %v222_v32 }
  0xbb   : > { %v250_v34 = vpop.f32.mrf.mxu0 }
  0xc1   : > { %v253_v33 = vpop.f32.mrf.mxu2 }
  0xc2   : > { %273 = vmatpush.msra.mxu1 %v253_v33 }
  0xc4   : > { %274 = vmatpush.msra.mxu1 %v250_v34 }
  0xc5   : > { %382 = vmatmul.msk.f32.vlgmr.msra.gmra.mxu1 %vm200_vm0, %v226_v35 }
 0x142   : > { %v276_v37 = vpop.f32.mrf.mxu1 }
 0x143   : > { %v281_v38 = vsub.f32 %v276_v37, %v280_v36 }
 0x145   : > { %v282_v39 = vmul.f32 %v281_v38, %v281_v38 }
 0x147   : > { %v284_v40 = vsel %vm283_vm2, %v282_v39, 0.0 }
 0x148   : > { %v285_v41 = vrot.slane %v284_v40, 4 }
 0x14a   : > { %v286_v42 = vadd.f32 %v285_v41, %v284_v40 }
 0x14c   : > { %v287_v43 = vrot.slane %v286_v42, 2 }
 0x14e   : > { %v288_v44 = vadd.f32 %v287_v43, %v286_v42 }
 0x150   : > { %v289_v45 = vrot.slane %v288_v44, 1 }
 0x152   : > { %v290_v46 = vadd.f32 %v289_v45, %v288_v44 }
 0x154   : > { %292 = vst.msk [vmem:[%s191_s26] sm:$0x1] %vm291_vm3, %v290_v46 }
 0x155   : > { %496 = shalt.err (!%p493_p4)
}
 0x156   : > { %390 = dma.vmem_to_hbm [thread:$0]  (%p618_p11), %s305_s5, 16, %s307_s30, %s294_s6  }
 0x157 PF: > { %s318_s7 = sand.u32 1, %s523_s17   ;;  %p726_p7 = scmp.ge.s32.totalorder %s535_s20, 2 }
 0x158   : > { %s319_s14 = scalar_lea.sflag [#allocation6], %s318_s7 }
 0x159   : > { %p397_p5 = pnand %p726_p7, %p622_p12 }
 0x15b   : > { %p398_p8 = pneg %p397_p5 }
 0x15d   : > { %518 = dma.done.wait (%p398_p8), %s319_s14, 16  }
 0x15e   : > { %520 = vsyncadd (%p398_p8), %s319_s14, 4294967280  ;;  %p18_p10 = scmp.ge.s32.totalorder %s593_s22, 4   ;;  %s727_s17 = smov %s527_s18 }
 0x15f   : > { %s728_s18 = smov %s531_s19  ;;  %s729_s19 = smov %s605_s25 }
 0x160   : > { %s730_s20 = smov %s593_s22  ;;  %20 = sbr.rel (!%p18_p10) target bundleno = 7 (0x7), region = 77 }
 0x165   :  { %324 = vsyncpa [#allocation5], 1 }
 0x166   :  { %326 = vsyncpa [#allocation5 + $0x1], 1 }
 0x167   :  { %327 = vsyncpa [#allocation6], 1 }
 0x168   :  { %329 = vsyncpa [#allocation6 + $0x1], 1 }

</bundles_post_ra>
